<compile_context>
chip_gen: v6e
topology: v6e:2x2x1
jax: 0.10.0
libtpu: 0.0.40
codegen_flags: <defaults>
</compile_context>

<pallas_src>
from typing import NamedTuple

import jax
import jax.numpy as jnp
from jax.experimental import pallas as pl
from jax.experimental.pallas import tpu as pltpu


def _round_up(x: int, m: int) -> int:
    return ((x + m - 1) // m) * m


def _cdiv(a: int, b: int) -> int:
    return (a + b - 1) // b


class PackedParams(NamedTuple):
    w1_cat: jax.Array   # (D, LH_pad)   packed first-Linear weights (f32 or bf16)
    b1_cat: jax.Array   # (1, LH_pad)   packed first-Linear bias   (same dtype as w1_cat)
    w2_mix: jax.Array   # (1, LH_pad)   mix-folded projection (always f32)
    b2_mix: jax.Array   # (1,)          mix-folded scalar bias (always f32)


def pack_params(params, level: int = -1, dtype=jnp.float32) -> PackedParams:
    """Pack/fold the module parameters ONCE (hoisted out of the per-call forward)."""
    W1, b1, W2t, b2, level_weights = params
    L, D, H = W1.shape

    if 0 <= level < L:
        # Single-level path: only the selected head's params (L-fold less compute
        # and HBM traffic; no garbage leakage from unused heads).
        w1 = W1[level]                                              # (D, H)
        b1c = b1[level][None, :]                                    # (1, H)
        w2 = W2t[level].astype(jnp.float32)                         # (1, H)
        b2m = b2[level].astype(jnp.float32).reshape(1)              # (1,)
    else:
        # Weighted path: fold softmax(level_weights) and b2 into the projection
        # vector / scalar (done once, here, not per forward call).
        mix = jax.nn.softmax(level_weights.astype(jnp.float32))             # (L,)
        w1 = jnp.transpose(W1, (1, 0, 2)).reshape(D, L * H)                 # (D, L*H)
        b1c = b1.reshape(1, L * H)                                          # (1, L*H)
        w2 = (mix[:, None, None] * W2t.astype(jnp.float32)).reshape(1, L * H)
        b2m = jnp.sum(mix * b2.astype(jnp.float32)).reshape(1)

    # Zero-pad the packed column axis to a lane-dense multiple of 128 (no-op on result).
    LH = w1.shape[1]
    LH_pad = _round_up(LH, 128)
    if LH_pad != LH:
        pad = LH_pad - LH
        w1 = jnp.pad(w1, ((0, 0), (0, pad)))
        b1c = jnp.pad(b1c, ((0, 0), (0, pad)))
        w2 = jnp.pad(w2, ((0, 0), (0, pad)))

    # Streaming dtype (f32 exact, or bf16 to halve HBM/VMEM bytes of x and W1).
    w1 = w1.astype(dtype)
    b1c = b1c.astype(dtype)
    return PackedParams(w1, b1c, w2, b2m)


def hvf_kernel(b2_ref, x_ref, w1_ref, b1_ref, w2_ref, out_ref, acc_ref):
    """Per (batch-tile i, LH-tile j) step:
         acc += sum(relu(x @ W1[:, j] + b1[:, j]) * w2[:, j], axis=-1)
       Output is revisited across j; init at j==0, finalize (+ b2) at the last j."""
    j = pl.program_id(1)

    @pl.when(j == 0)
    def _init():
        acc_ref[...] = jnp.zeros_like(acc_ref)

    # Dropout(0.1) == identity in eval/inference mode.
    # TODO(synk): training-mode dropout (stochastic masking) not implemented.
    h = jnp.dot(x_ref[...], w1_ref[...], preferred_element_type=jnp.float32)
    h = jnp.maximum(h + b1_ref[...].astype(jnp.float32), 0.0)
    acc_ref[...] += jnp.sum(h * w2_ref[...], axis=-1, keepdims=True)

    @pl.when(j == pl.num_programs(1) - 1)
    def _finalize():
        out_ref[...] = (acc_ref[...] + b2_ref[0]).astype(out_ref.dtype)


def hierarchical_value_forward(x, packed: PackedParams):
    """Pallas equivalent of HierarchicalValueFunction.forward(x, level) for
    pre-packed parameters (use pack_params(..., level=...) once beforehand)."""
    w1, b1c, w2, b2m = packed
    D, LHp = w1.shape

    orig_shape = x.shape
    x2 = x[None, :] if x.ndim == 1 else x.reshape(-1, orig_shape[-1])
    assert x2.shape[-1] == D, "input feature dim does not match packed params"
    B = x2.shape[0]
    out_dtype = x.dtype
    xs = x2 if x2.dtype == w1.dtype else x2.astype(w1.dtype)   # bf16 streaming if packed bf16

    x_it = jnp.dtype(xs.dtype).itemsize
    w_it = jnp.dtype(w1.dtype).itemsize
    sub = max(8, 32 // w_it)             # sublane packing: f32 -> 8, bf16 -> 16
    D_lane = _round_up(D, 128)

    # ---- batch tile: large enough to amortize ~0.35us/step, small enough that the
    #      double-buffered x tile stays a few MiB; guarantee >= 2 grid steps when B
    #      allows so the "parallel" axis can split across v7x's 2 TensorCores. --------
    tb_cap = min(1024, max(8, ((4 << 20) // (2 * D_lane * x_it)) // 8 * 8))
    TB = max(8, min(tb_cap, _round_up(_cdiv(B, 2), 8)))
    nb = _cdiv(B, TB)                    # ragged last block handled by Pallas (no jnp.pad)

    # ---- LH tile: keep packed W1 resident when it fits a conservative VMEM working
    #      set (sized for v7x's 64 MiB); otherwise stream lane-aligned column tiles
    #      over a second ("arbitrary") grid axis with an f32 accumulator. ------------
    fixed = (2 * TB * D_lane * x_it      # x tiles (double-buffered)
             + 2 * TB * 128 * 4          # out tiles (lane-padded)
             + TB * 128 * 4)             # accumulator scratch
    per_col = 2 * _round_up(D, sub) * w_it + 16 * (w_it + 4) + 2 * TB * 4
    vmem_target = 40 << 20
    max_cols = max(128, (max(0, vmem_target - fixed) // per_col) // 128 * 128)
    if LHp <= max_cols:
        TLH, n_lh = LHp, 1
    else:
        n_lh = _cdiv(LHp, max_cols)
        TLH = _round_up(_cdiv(LHp, n_lh), 128)
        if n_lh * TLH != LHp:
            # Rare fallback (huge D*L*H only): extra zero columns so the reduction
            # axis tiles evenly — OOB columns would otherwise pollute the accumulator.
            padc = n_lh * TLH - LHp
            w1 = jnp.pad(w1, ((0, 0), (0, padc)))
            b1c = jnp.pad(b1c, ((0, 0), (0, padc)))
            w2 = jnp.pad(w2, ((0, 0), (0, padc)))
            LHp = n_lh * TLH
    resident = n_lh == 1

    # ---- VMEM budget: streams + weight buffers + the compiler-allocated (TB, TLH)
    #      f32 matmul/ReLU intermediate (+ slack). Tiling keeps this under target. ---
    budget = (fixed
              + 2 * _round_up(D, sub) * TLH * w_it   # W1 tile buffers
              + 16 * TLH * (w_it + 4)                # b1 + w2 buffers
              + 2 * TB * TLH * 4)                    # h / ReLU temporaries (f32)
    vmem_limit = int(min(max(int(budget * 1.25) + (4 << 20), 16 << 20), 60 << 20))

    w_bytes = D * LHp * w_it + LHp * (w_it + 4)
    cost = pl.CostEstimate(
        flops=2 * B * D * LHp + 4 * B * LHp,
        transcendentals=0,
        bytes_accessed=(B * D * x_it
                        + (w_bytes if resident else nb * w_bytes)
                        + B * jnp.dtype(out_dtype).itemsize + 4),
    )

    def _build(single_buffer_weights: bool):
        def w_spec(shape, imap):
            if single_buffer_weights:
                # Resident weights: constant block index -> no double-buffering needed.
                return pl.BlockSpec(shape, imap, pipeline_mode=pl.Buffered(1))
            return pl.BlockSpec(shape, imap)

        return pl.pallas_call(
            hvf_kernel,
            out_shape=jax.ShapeDtypeStruct((B, 1), out_dtype),
            grid=(nb, n_lh),
            in_specs=[
                pl.BlockSpec(memory_space=pltpu.SMEM),          # b2_mix (1,) scalar
                pl.BlockSpec((TB, D), lambda i, j: (i, 0)),     # x tile  (streamed over i)
                w_spec((D, TLH), lambda i, j: (0, j)),          # W1cat   (resident / LH-tiled)
                w_spec((1, TLH), lambda i, j: (0, j)),          # b1cat
                w_spec((1, TLH), lambda i, j: (0, j)),          # w2mix
            ],
            out_specs=pl.BlockSpec((TB, 1), lambda i, j: (i, 0)),
            scratch_shapes=[pltpu.VMEM((TB, 1), jnp.float32)],
            compiler_params=pltpu.CompilerParams(
                dimension_semantics=("parallel", "arbitrary"),
                vmem_limit_bytes=vmem_limit,
            ),
            cost_estimate=cost,
        )

    args = (b2m, xs, w1, b1c, w2)
    if resident:
        try:
            out = _build(True)(*args)
        except Exception:   # pragma: no cover — JAX without BlockSpec pipeline_mode
            out = _build(False)(*args)
    else:
        out = _build(False)(*args)

    return out.reshape(orig_shape[:-1] + (1,)) if x.ndim != 2 else out


# ----------------------------------------------------------------------------------
# Parameter init (matches the PyTorch module) and a plain-JAX reference.
# ----------------------------------------------------------------------------------
def init_params(key, input_dim: int, hidden_dim: int, num_levels: int):
    """xavier_uniform weights, zero biases, level_weights = ones / num_levels."""
    def xavier(k, fan_in, fan_out, shape):
        bound = (6.0 / (fan_in + fan_out)) ** 0.5
        return jax.random.uniform(k, shape, jnp.float32, -bound, bound)

    keys = jax.random.split(key, 2 * num_levels)
    W1 = jnp.stack([xavier(keys[2 * l], input_dim, hidden_dim,
                           (input_dim, hidden_dim)) for l in range(num_levels)])
    b1 = jnp.zeros((num_levels, hidden_dim), jnp.float32)
    # second Linear weight is (1, hidden_dim) in PyTorch (out, in); keep as (L, 1, H)
    W2t = jnp.stack([xavier(keys[2 * l + 1], hidden_dim, 1,
                            (1, hidden_dim)) for l in range(num_levels)])
    b2 = jnp.zeros((num_levels,), jnp.float32)
    level_weights = jnp.ones((num_levels,), jnp.float32) / num_levels
    return W1, b1, W2t, b2, level_weights


def reference_forward(x, params, level: int = -1):
    W1, b1, W2t, b2, level_weights = params
    L = W1.shape[0]
    vals = []
    for l in range(L):
        h = jnp.maximum(x @ W1[l] + b1[l], 0.0)
        vals.append(jnp.sum(h * W2t[l], axis=-1, keepdims=True) + b2[l])   # (B, 1)
    if 0 <= level < L:
        return vals[level]
    stacked = jnp.stack(vals, axis=-1)                  # (B, 1, L)
    w = jax.nn.softmax(level_weights)
    return jnp.sum(stacked * w, axis=-1)                # (B, 1)


if __name__ == "__main__":
    batch = 8
    input_dim = 64
    hidden_dim = 32
    num_levels = 3

    key = jax.random.PRNGKey(0)
    k_params, k_x = jax.random.split(key)
    params = init_params(k_params, input_dim, hidden_dim, num_levels)
    x = jax.random.normal(k_x, (batch, input_dim), jnp.float32)

    # Pack ONCE (hoisted out of the per-call forward), reuse for every call.
    packed = pack_params(params, level=-1)
    packed_l1 = pack_params(params, level=1)
    packed_bf16 = pack_params(params, level=-1, dtype=jnp.bfloat16)

    # Weighted (level = -1) path.
    out = jax.block_until_ready(hierarchical_value_forward(x, packed))
    ref = reference_forward(x, params, level=-1)
    assert out.shape == (batch, 1)
    assert jnp.allclose(out, ref, atol=1e-5, rtol=1e-5)

    # Single-level path (only that head is packed / computed).
    out1 = jax.block_until_ready(hierarchical_value_forward(x, packed_l1))
    ref1 = reference_forward(x, params, level=1)
    assert jnp.allclose(out1, ref1, atol=1e-5, rtol=1e-5)

    # Ragged batch inside a single tile (exercises the clipped last-block write).
    x5 = jax.random.normal(jax.random.PRNGKey(3), (5, input_dim), jnp.float32)
    out5 = jax.block_until_ready(hierarchical_value_forward(x5, packed))
    assert out5.shape == (5, 1)
    assert jnp.allclose(out5, reference_forward(x5, params, level=-1), atol=1e-5, rtol=1e-5)

    # Ragged batch across >= 2 grid steps (parallel axis + ragged last block, no padding).
    x20 = jax.random.normal(jax.random.PRNGKey(4), (20, input_dim), jnp.float32)
    out20 = jax.block_until_ready(hierarchical_value_forward(x20, packed))
    assert out20.shape == (20, 1)
    assert jnp.allclose(out20, reference_forward(x20, params, level=-1), atol=1e-5, rtol=1e-5)

    # bf16 streaming path (halves HBM/VMEM bytes of x and W1; relaxed tolerance).
    out_bf = jax.block_until_ready(hierarchical_value_forward(x, packed_bf16))
    assert jnp.allclose(out_bf.astype(jnp.float32), ref, atol=1e-1, rtol=1e-1)

    print("KERNEL_OK")
</pallas_src>

<mosaic_0001>
module attributes {stable_mosaic.version = 11 : i64} {
  func.func @hvf_kernel(%arg0: i32, %arg1: i32, %arg2: memref<1xf32, #tpu.memory_space<smem>>, %arg3: memref<8x64xf32, #tpu.memory_space<vmem>>, %arg4: memref<64x128xf32, #tpu.memory_space<vmem>>, %arg5: memref<1x128xf32, #tpu.memory_space<vmem>>, %arg6: memref<1x128xf32, #tpu.memory_space<vmem>>, %arg7: memref<8x1xf32, #tpu.memory_space<vmem>>, %arg8: memref<8x1xf32, #tpu.memory_space<vmem>>) attributes {dimension_semantics = [#tpu.dimension_semantics<parallel>, #tpu.dimension_semantics<arbitrary>], iteration_bounds = array<i64: 1, 1>, scalar_prefetch = 0 : i64, scratch_operands = 1 : i64, tpu.core_type = #tpu.core_type<tc>, window_params = [{transform_indices = @transform_0, window_bounds = array<i64: 1>}, {transform_indices = @transform_1, window_bounds = array<i64: 8, 64>}, {pipeline_mode = #tpu.pipeline_mode<synchronous>, transform_indices = @transform_2, window_bounds = array<i64: 64, 128>}, {pipeline_mode = #tpu.pipeline_mode<synchronous>, transform_indices = @transform_3, window_bounds = array<i64: 1, 128>}, {pipeline_mode = #tpu.pipeline_mode<synchronous>, transform_indices = @transform_4, window_bounds = array<i64: 1, 128>}, {transform_indices = @transform_5, window_bounds = array<i64: 8, 1>}]} {
    %c0_i32 = arith.constant 0 : i32
    %0 = arith.cmpi eq, %arg1, %c0_i32 : i32
    %1 = arith.extui %0 : i1 to i32
    %c0_i32_0 = arith.constant 0 : i32
    %2 = arith.cmpi ne, %1, %c0_i32_0 : i32
    scf.if %2 {
      %cst_16 = arith.constant 0.000000e+00 : f32
      %22 = vector.broadcast %cst_16 : f32 to vector<8x1xf32>
      %c0_17 = arith.constant 0 : index
      %c0_18 = arith.constant 0 : index
      %23 = vector.load %arg8[%c0_17, %c0_18] : memref<8x1xf32, #tpu.memory_space<vmem>>, vector<8x1xf32>
      tpu.vector_store %arg8[%c0_17, %c0_18], %22 {strides = array<i32>} : memref<8x1xf32, #tpu.memory_space<vmem>>, vector<8x1xf32>,
    } else {
    }
    %c0 = arith.constant 0 : index
    %c0_1 = arith.constant 0 : index
    %3 = vector.load %arg3[%c0, %c0_1] : memref<8x64xf32, #tpu.memory_space<vmem>>, vector<8x64xf32>
    %c0_2 = arith.constant 0 : index
    %c0_3 = arith.constant 0 : index
    %4 = vector.load %arg4[%c0_2, %c0_3] : memref<64x128xf32, #tpu.memory_space<vmem>>, vector<64x128xf32>
    %cst = arith.constant dense<0.000000e+00> : vector<8x128xf32>
    %5 = tpu.matmul %3, %4, %cst {dimension_numbers = #tpu.dot_dimension_numbers<[1], [0], [0], [1], [0, 0, 1, 1], [], []>} : vector<8x64xf32>, vector<64x128xf32>, vector<8x128xf32> -> vector<8x128xf32>
    %c0_4 = arith.constant 0 : index
    %c0_5 = arith.constant 0 : index
    %6 = vector.load %arg5[%c0_4, %c0_5] : memref<1x128xf32, #tpu.memory_space<vmem>>, vector<1x128xf32>
    %7 = vector.broadcast %6 : vector<1x128xf32> to vector<8x128xf32>
    %8 = arith.addf %5, %7 : vector<8x128xf32>
    %cst_6 = arith.constant 0.000000e+00 : f32
    %9 = vector.broadcast %cst_6 : f32 to vector<8x128xf32>
    %10 = arith.maximumf %8, %9 : vector<8x128xf32>
    %c0_7 = arith.constant 0 : index
    %c0_8 = arith.constant 0 : index
    %11 = vector.load %arg8[%c0_7, %c0_8] : memref<8x1xf32, #tpu.memory_space<vmem>>, vector<8x1xf32>
    %c0_9 = arith.constant 0 : index
    %c0_10 = arith.constant 0 : index
    %12 = vector.load %arg6[%c0_9, %c0_10] : memref<1x128xf32, #tpu.memory_space<vmem>>, vector<1x128xf32>
    %13 = vector.broadcast %12 : vector<1x128xf32> to vector<8x128xf32>
    %14 = arith.mulf %10, %13 : vector<8x128xf32>
    %cst_11 = arith.constant dense<0.000000e+00> : vector<8xf32>
    %15 = vector.multi_reduction <add>, %14, %cst_11 [1] : vector<8x128xf32> to vector<8xf32>
    %16 = vector.shape_cast %15 : vector<8xf32> to vector<8x1xf32>
    %17 = arith.addf %11, %16 : vector<8x1xf32>
    %c0_12 = arith.constant 0 : index
    %c0_13 = arith.constant 0 : index
    %18 = vector.load %arg8[%c0_12, %c0_13] : memref<8x1xf32, #tpu.memory_space<vmem>>, vector<8x1xf32>
    tpu.vector_store %arg8[%c0_12, %c0_13], %17 {strides = array<i32>} : memref<8x1xf32, #tpu.memory_space<vmem>>, vector<8x1xf32>,
    %c0_i32_14 = arith.constant 0 : i32
    %19 = arith.cmpi eq, %arg1, %c0_i32_14 : i32
    %20 = arith.extui %19 : i1 to i32
    %c0_i32_15 = arith.constant 0 : i32
    %21 = arith.cmpi ne, %20, %c0_i32_15 : i32
    scf.if %21 {
      %c0_16 = arith.constant 0 : index
      %c0_17 = arith.constant 0 : index
      %22 = vector.load %arg8[%c0_16, %c0_17] : memref<8x1xf32, #tpu.memory_space<vmem>>, vector<8x1xf32>
      %c0_18 = arith.constant 0 : index
      %23 = memref.load %arg2[%c0_18] : memref<1xf32, #tpu.memory_space<smem>>
      %24 = vector.broadcast %23 : f32 to vector<8x1xf32>
      %25 = arith.addf %22, %24 : vector<8x1xf32>
      %c0_19 = arith.constant 0 : index
      %c0_20 = arith.constant 0 : index
      %26 = vector.load %arg7[%c0_19, %c0_20] : memref<8x1xf32, #tpu.memory_space<vmem>>, vector<8x1xf32>
      tpu.vector_store %arg7[%c0_19, %c0_20], %25 {strides = array<i32>} : memref<8x1xf32, #tpu.memory_space<vmem>>, vector<8x1xf32>,
    } else {
    }
    return
  }
  func.func @transform_0(%arg0: i32, %arg1: i32) -> i32 {
    %c0_i32 = arith.constant 0 : i32
    %c0_i32_0 = arith.constant 0 : i32
    return %c0_i32 : i32
  }
  func.func @transform_1(%arg0: i32, %arg1: i32) -> (i32, i32) {
    %c0_i32 = arith.constant 0 : i32
    %c0_i32_0 = arith.constant 0 : i32
    return %arg0, %c0_i32 : i32, i32
  }
  func.func @transform_2(%arg0: i32, %arg1: i32) -> (i32, i32) {
    %c0_i32 = arith.constant 0 : i32
    %c0_i32_0 = arith.constant 0 : i32
    return %c0_i32, %arg1 : i32, i32
  }
  func.func @transform_3(%arg0: i32, %arg1: i32) -> (i32, i32) {
    %c0_i32 = arith.constant 0 : i32
    %c0_i32_0 = arith.constant 0 : i32
    return %c0_i32, %arg1 : i32, i32
  }
  func.func @transform_4(%arg0: i32, %arg1: i32) -> (i32, i32) {
    %c0_i32 = arith.constant 0 : i32
    %c0_i32_0 = arith.constant 0 : i32
    return %c0_i32, %arg1 : i32, i32
  }
  func.func @transform_5(%arg0: i32, %arg1: i32) -> (i32, i32) {
    %c0_i32 = arith.constant 0 : i32
    %c0_i32_0 = arith.constant 0 : i32
    return %arg0, %c0_i32 : i32, i32
  }
}

module attributes {stable_mosaic.version = 11 : i64} {
  func.func @hvf_kernel(%arg0: i32, %arg1: i32, %arg2: memref<1xf32, #tpu.memory_space<smem>>, %arg3: memref<8x64xf32, #tpu.memory_space<vmem>>, %arg4: memref<64x128xf32, #tpu.memory_space<vmem>>, %arg5: memref<1x128xf32, #tpu.memory_space<vmem>>, %arg6: memref<1x128xf32, #tpu.memory_space<vmem>>, %arg7: memref<8x1xf32, #tpu.memory_space<vmem>>, %arg8: memref<8x1xf32, #tpu.memory_space<vmem>>) attributes {dimension_semantics = [#tpu.dimension_semantics<parallel>, #tpu.dimension_semantics<arbitrary>], iteration_bounds = array<i64: 1, 1>, scalar_prefetch = 0 : i64, scratch_operands = 1 : i64, tpu.core_type = #tpu.core_type<tc>, window_params = [{transform_indices = @transform_0, window_bounds = array<i64: 1>}, {transform_indices = @transform_1, window_bounds = array<i64: 8, 64>}, {transform_indices = @transform_2, window_bounds = array<i64: 64, 128>}, {transform_indices = @transform_3, window_bounds = array<i64: 1, 128>}, {transform_indices = @transform_4, window_bounds = array<i64: 1, 128>}, {transform_indices = @transform_5, window_bounds = array<i64: 8, 1>}]} {
    %c0_i32 = arith.constant 0 : i32
    %0 = arith.cmpi eq, %arg1, %c0_i32 : i32
    %1 = arith.extui %0 : i1 to i32
    %c0_i32_0 = arith.constant 0 : i32
    %2 = arith.cmpi ne, %1, %c0_i32_0 : i32
    scf.if %2 {
      %cst_16 = arith.constant 0.000000e+00 : f32
      %22 = vector.broadcast %cst_16 : f32 to vector<8x1xf32>
      %c0_17 = arith.constant 0 : index
      %c0_18 = arith.constant 0 : index
      %23 = vector.load %arg8[%c0_17, %c0_18] : memref<8x1xf32, #tpu.memory_space<vmem>>, vector<8x1xf32>
      tpu.vector_store %arg8[%c0_17, %c0_18], %22 {strides = array<i32>} : memref<8x1xf32, #tpu.memory_space<vmem>>, vector<8x1xf32>,
    } else {
    }
    %c0 = arith.constant 0 : index
    %c0_1 = arith.constant 0 : index
    %3 = vector.load %arg3[%c0, %c0_1] : memref<8x64xf32, #tpu.memory_space<vmem>>, vector<8x64xf32>
    %c0_2 = arith.constant 0 : index
    %c0_3 = arith.constant 0 : index
    %4 = vector.load %arg4[%c0_2, %c0_3] : memref<64x128xf32, #tpu.memory_space<vmem>>, vector<64x128xf32>
    %cst = arith.constant dense<0.000000e+00> : vector<8x128xf32>
    %5 = tpu.matmul %3, %4, %cst {dimension_numbers = #tpu.dot_dimension_numbers<[1], [0], [0], [1], [0, 0, 1, 1], [], []>} : vector<8x64xf32>, vector<64x128xf32>, vector<8x128xf32> -> vector<8x128xf32>
    %c0_4 = arith.constant 0 : index
    %c0_5 = arith.constant 0 : index
    %6 = vector.load %arg5[%c0_4, %c0_5] : memref<1x128xf32, #tpu.memory_space<vmem>>, vector<1x128xf32>
    %7 = vector.broadcast %6 : vector<1x128xf32> to vector<8x128xf32>
    %8 = arith.addf %5, %7 : vector<8x128xf32>
    %cst_6 = arith.constant 0.000000e+00 : f32
    %9 = vector.broadcast %cst_6 : f32 to vector<8x128xf32>
    %10 = arith.maximumf %8, %9 : vector<8x128xf32>
    %c0_7 = arith.constant 0 : index
    %c0_8 = arith.constant 0 : index
    %11 = vector.load %arg8[%c0_7, %c0_8] : memref<8x1xf32, #tpu.memory_space<vmem>>, vector<8x1xf32>
    %c0_9 = arith.constant 0 : index
    %c0_10 = arith.constant 0 : index
    %12 = vector.load %arg6[%c0_9, %c0_10] : memref<1x128xf32, #tpu.memory_space<vmem>>, vector<1x128xf32>
    %13 = vector.broadcast %12 : vector<1x128xf32> to vector<8x128xf32>
    %14 = arith.mulf %10, %13 : vector<8x128xf32>
    %cst_11 = arith.constant dense<0.000000e+00> : vector<8xf32>
    %15 = vector.multi_reduction <add>, %14, %cst_11 [1] : vector<8x128xf32> to vector<8xf32>
    %16 = vector.shape_cast %15 : vector<8xf32> to vector<8x1xf32>
    %17 = arith.addf %11, %16 : vector<8x1xf32>
    %c0_12 = arith.constant 0 : index
    %c0_13 = arith.constant 0 : index
    %18 = vector.load %arg8[%c0_12, %c0_13] : memref<8x1xf32, #tpu.memory_space<vmem>>, vector<8x1xf32>
    tpu.vector_store %arg8[%c0_12, %c0_13], %17 {strides = array<i32>} : memref<8x1xf32, #tpu.memory_space<vmem>>, vector<8x1xf32>,
    %c0_i32_14 = arith.constant 0 : i32
    %19 = arith.cmpi eq, %arg1, %c0_i32_14 : i32
    %20 = arith.extui %19 : i1 to i32
    %c0_i32_15 = arith.constant 0 : i32
    %21 = arith.cmpi ne, %20, %c0_i32_15 : i32
    scf.if %21 {
      %c0_16 = arith.constant 0 : index
      %c0_17 = arith.constant 0 : index
      %22 = vector.load %arg8[%c0_16, %c0_17] : memref<8x1xf32, #tpu.memory_space<vmem>>, vector<8x1xf32>
      %c0_18 = arith.constant 0 : index
      %23 = memref.load %arg2[%c0_18] : memref<1xf32, #tpu.memory_space<smem>>
      %24 = vector.broadcast %23 : f32 to vector<8x1xf32>
      %25 = arith.addf %22, %24 : vector<8x1xf32>
      %c0_19 = arith.constant 0 : index
      %c0_20 = arith.constant 0 : index
      %26 = vector.load %arg7[%c0_19, %c0_20] : memref<8x1xf32, #tpu.memory_space<vmem>>, vector<8x1xf32>
      tpu.vector_store %arg7[%c0_19, %c0_20], %25 {strides = array<i32>} : memref<8x1xf32, #tpu.memory_space<vmem>>, vector<8x1xf32>,
    } else {
    }
    return
  }
  func.func @transform_0(%arg0: i32, %arg1: i32) -> i32 {
    %c0_i32 = arith.constant 0 : i32
    %c0_i32_0 = arith.constant 0 : i32
    return %c0_i32 : i32
  }
  func.func @transform_1(%arg0: i32, %arg1: i32) -> (i32, i32) {
    %c0_i32 = arith.constant 0 : i32
    %c0_i32_0 = arith.constant 0 : i32
    return %arg0, %c0_i32 : i32, i32
  }
  func.func @transform_2(%arg0: i32, %arg1: i32) -> (i32, i32) {
    %c0_i32 = arith.constant 0 : i32
    %c0_i32_0 = arith.constant 0 : i32
    return %c0_i32, %arg1 : i32, i32
  }
  func.func @transform_3(%arg0: i32, %arg1: i32) -> (i32, i32) {
    %c0_i32 = arith.constant 0 : i32
    %c0_i32_0 = arith.constant 0 : i32
    return %c0_i32, %arg1 : i32, i32
  }
  func.func @transform_4(%arg0: i32, %arg1: i32) -> (i32, i32) {
    %c0_i32 = arith.constant 0 : i32
    %c0_i32_0 = arith.constant 0 : i32
    return %c0_i32, %arg1 : i32, i32
  }
  func.func @transform_5(%arg0: i32, %arg1: i32) -> (i32, i32) {
    %c0_i32 = arith.constant 0 : i32
    %c0_i32_0 = arith.constant 0 : i32
    return %arg0, %c0_i32 : i32, i32
  }
}

</mosaic_0001>

<bundles_post_ra>
// kernel: tpu_custom_call.1
= control target key start
LH: loop header
LB: loop body
LE: loop exit
PB: predicated region body
PF: predicated region fallthrough
CT: control target
= control target key end

     0   :  { %11 = vsyncpa [#allocation5], 0  ;;  %s310_s0 = inlined_call_operand.<no memory space> [shape: f32[1], index: 0, kind: input, shape index: {}]   ;;  %s311_s1 = inlined_call_operand.hbm [shape: f32[8,64], index: 1, kind: input, shape index: {}]   ;;  %s312_s2 = inlined_call_operand.hbm [shape: f32[64,128], index: 2, kind: input, shape index: {}]   ;;  %s313_s3 = inlined_call_operand.vmem [shape: f32[1,128], index: 3, kind: input, shape index: {}]   ;;  %s314_s4 = inlined_call_operand.vmem [shape: f32[1,128], index: 4, kind: input, shape index: {}]   ;;  %s315_s5 = inlined_call_operand.vmem [shape: f32[8,1], index: 5, kind: output, shape index: {}]  }
   0x1   :  { %12 = vsyncpa [#allocation7], 0  ;;  %s253_s18 = smov [#allocation4]   ;;  %s254_s20 = smov [#allocation6]  }
   0x2   :  { %s21_s19 = sshll.u32 %s253_s18, 4  ;;  %s30_s21 = sshll.u32 %s254_s20, 4  ;;  %s22_s19 = int_to_ptr.vmem [resolvable:$true] %s21_s19  ;;  %s31_s21 = int_to_ptr.vmem [resolvable:$true] %s30_s21 }
   0x3   :  { %s217_s22 = scalar_lea.vmem %s22_s19, 128  ;;  %p222_p1 = scmp.lt.s32.totalorder %s22_s19, %s22_s19 }
   0x4   :  { %p218_p0 = scmp.ne.s32.totalorder %s22_s19, %s217_s22  ;;  %p223_p2 = scmp.lt.s32.totalorder %s217_s22, %s217_s22 }
   0x6   :  { %p224_p3 = por %p223_p2, %p222_p1 }
   0x8   :  { %p225_p4 = pnand %p224_p3, %p218_p0 }
   0xa   :  { %228 = shalt.err (!%p225_p4)
}
   0xb   :  { %24 = dma.hbm_to_vmem [thread:$0]  %s311_s1, 128, %s22_s19, [#allocation5]  }
   0xc   :  { %s237_s25 = scalar_lea.vmem %s31_s21, 1024  ;;  %p242_p6 = scmp.lt.s32.totalorder %s31_s21, %s31_s21 }
   0xd   :  { %p238_p5 = scmp.ne.s32.totalorder %s31_s21, %s237_s25  ;;  %p243_p7 = scmp.lt.s32.totalorder %s237_s25, %s237_s25 }
   0xf   :  { %p244_p8 = por %p243_p7, %p242_p6 }
  0x11   :  { %p245_p9 = pnand %p244_p8, %p238_p5 }
  0x13   :  { %248 = shalt.err (!%p245_p9)
}
  0x14   :  { %s255_s26 = smov 128   ;;  %s256_s27 = smov 8  }
  0x15   :  { %36 = dma.hbm_to_vmem [thread:$0]  %s312_s2, 1024, %s31_s21, [#allocation7], %s255_s26, %s255_s26, %s256_s27  }
  0x16   :  { %249 = dma.done.wait [#allocation5], 128  }
  0x17   :  { %250 = vsyncadd [#allocation5], 4294967168 }
  0x18   :  { %251 = dma.done.wait [#allocation7], 1024  }
  0x19   :  { %252 = vsyncadd [#allocation7], 4294966272  ;;  %v257_v0 = vmov 0.0   ;;  %vm258_vm0 = vmmov 0   ;;  %v61_v1 = vld [vmem:[#allocation6 + $0x38] sm:$0xff]  ;;  %v60_v2 = vld [vmem:[#allocation6 + $0x30] sm:$0xff]  ;;  %v163_v20 = vstv %s310_s0 }
  0x1a   :  { %184 = vmatprep.subr.mxu0 %v257_v0  ;;  %200 = vmatprep.mubr.msk.f32.mxu0 %vm258_vm0, %v257_v0  ;;  %v59_v3 = vld [vmem:[#allocation6 + $0x28] sm:$0xff]  ;;  %v58_v4 = vld [vmem:[#allocation6 + $0x20] sm:$0xff]  ;;  %v57_v5 = vld [vmem:[#allocation6 + $0x18] sm:$0xff]  ;;  %vm69_vm1 = vcmask 523264   ;;  %vm51_vm2 = vcmask 7168  }
  0x1b   :  { %185 = vmatpush3.msra.mxu0 %v61_v1  ;;  %v56_v6 = vld [vmem:[#allocation6 + $0x10] sm:$0xff]  ;;  %v55_v7 = vld [vmem:[#allocation6 + $0x8] sm:$0xff]  ;;  %v54_v8 = vld [vmem:[#allocation6] sm:$0xff]  ;;  %52 = vst.msk [vmem:[#allocation2] sm:$0xff] %vm51_vm2, %v257_v0 }
  0x1c   :  { %186 = vmatprep.subr.mxu0 %v257_v0  ;;  %v53_v9 = vld [vmem:[#allocation4] sm:$0xff]  ;;  %v172_v10 = vld [vmem:[%s313_s3] ss:$0 sm:$0xff] }
  0x1d   :  { %187 = vmatpush3.msra.mxu0 %v60_v2  ;;  %v174_v14 = vld [vmem:[%s314_s4] ss:$0 sm:$0xff] }
  0x1e   :  { %188 = vmatprep.subr.mxu0 %v257_v0 }
  0x1f   :  { %189 = vmatpush3.msra.mxu0 %v59_v3 }
  0x20   :  { %190 = vmatprep.subr.mxu0 %v257_v0 }
  0x21   :  { %191 = vmatpush3.msra.mxu0 %v58_v4 }
  0x22   :  { %192 = vmatprep.subr.mxu0 %v257_v0  ;;  %v144_v17 = vld [vmem:[#allocation2] sm:$0xff] }
  0x23   :  { %193 = vmatpush3.msra.mxu0 %v57_v5 }
  0x24   :  { %194 = vmatprep.subr.mxu0 %v257_v0 }
  0x25   :  { %195 = vmatpush3.msra.mxu0 %v56_v6 }
  0x26   :  { %196 = vmatprep.subr.mxu0 %v257_v0 }
  0x27   :  { %197 = vmatpush3.msra.mxu0 %v55_v7 }
  0x28   :  { %198 = vmatprep.subr.mxu0 %v257_v0 }
  0x29   :  { %199 = vmatpush3.msra.mxu0 %v54_v8 }
  0x2a   :  { %201 = vmatmul.mubr.msk.f32.vlgmr.msra.gmra.mxu0 %vm69_vm1, %v53_v9 }
  0xea   :  { %v139_v11 = vpop.f32.mrf.mxu0 }
  0xeb   :  { %v140_v12 = vadd.f32 %v172_v10, %v139_v11 }
  0xec   :  { %v202_v13 = vpop.f32.mrf.mxu0 }
  0xed   :  { %v143_v15 = vmax.f32 %v140_v12, 0.0 }
  0xef   :  { %v152_v16 = vmul.f32 %v174_v14, %v143_v15 }
  0xf1   :  { %153 = vadd.xlane.f32.xlu0 %v152_v16 }
 0x17a   :  { %v154_v18 = vpop.xlane.xlu0 %153 }
 0x17b   :  { %v155_v19 = vadd.f32 %v154_v18, %v144_v17 }
 0x17d   :  { %157 = vst.msk [vmem:[#allocation2] sm:$0xff] %vm51_vm2, %v155_v19 }
 0x184   :  { %v161_v21 = vld [vmem:[#allocation2] sm:$0xff] }
 0x185   :  { %v164_v22 = vadd.f32 %v163_v20, %v161_v21 }
 0x187   :  { %165 = vst.msk [vmem:[%s315_s5] sm:$0xff] %vm51_vm2, %v164_v22 }
 0x188   :  { %170 = vsyncpa [#allocation5], 1 }
 0x189   :  { %171 = vsyncpa [#allocation7], 1 }

// kernel: tpu_custom_call.1
= control target key start
LH: loop header
LB: loop body
LE: loop exit
PB: predicated region body
PF: predicated region fallthrough
CT: control target
= control target key end

     0   :  { %11 = vsyncpa [#allocation5], 0  ;;  %s310_s0 = inlined_call_operand.<no memory space> [shape: f32[1], index: 0, kind: input, shape index: {}]   ;;  %s311_s1 = inlined_call_operand.hbm [shape: f32[8,64], index: 1, kind: input, shape index: {}]   ;;  %s312_s2 = inlined_call_operand.hbm [shape: f32[64,128], index: 2, kind: input, shape index: {}]   ;;  %s313_s3 = inlined_call_operand.vmem [shape: f32[1,128], index: 3, kind: input, shape index: {}]   ;;  %s314_s4 = inlined_call_operand.vmem [shape: f32[1,128], index: 4, kind: input, shape index: {}]   ;;  %s315_s5 = inlined_call_operand.vmem [shape: f32[8,1], index: 5, kind: output, shape index: {}]  }
   0x1   :  { %12 = vsyncpa [#allocation7], 0  ;;  %s253_s18 = smov [#allocation4]   ;;  %s254_s20 = smov [#allocation6]  }
   0x2   :  { %s21_s19 = sshll.u32 %s253_s18, 4  ;;  %s30_s21 = sshll.u32 %s254_s20, 4  ;;  %s22_s19 = int_to_ptr.vmem [resolvable:$true] %s21_s19  ;;  %s31_s21 = int_to_ptr.vmem [resolvable:$true] %s30_s21 }
   0x3   :  { %s217_s22 = scalar_lea.vmem %s22_s19, 128  ;;  %p222_p1 = scmp.lt.s32.totalorder %s22_s19, %s22_s19 }
   0x4   :  { %p218_p0 = scmp.ne.s32.totalorder %s22_s19, %s217_s22  ;;  %p223_p2 = scmp.lt.s32.totalorder %s217_s22, %s217_s22 }
   0x6   :  { %p224_p3 = por %p223_p2, %p222_p1 }
   0x8   :  { %p225_p4 = pnand %p224_p3, %p218_p0 }
   0xa   :  { %228 = shalt.err (!%p225_p4)
}
   0xb   :  { %24 = dma.hbm_to_vmem [thread:$0]  %s311_s1, 128, %s22_s19, [#allocation5]  }
   0xc   :  { %s237_s25 = scalar_lea.vmem %s31_s21, 1024  ;;  %p242_p6 = scmp.lt.s32.totalorder %s31_s21, %s31_s21 }
   0xd   :  { %p238_p5 = scmp.ne.s32.totalorder %s31_s21, %s237_s25  ;;  %p243_p7 = scmp.lt.s32.totalorder %s237_s25, %s237_s25 }
   0xf   :  { %p244_p8 = por %p243_p7, %p242_p6 }
  0x11   :  { %p245_p9 = pnand %p244_p8, %p238_p5 }
  0x13   :  { %248 = shalt.err (!%p245_p9)
}
  0x14   :  { %s255_s26 = smov 128   ;;  %s256_s27 = smov 8  }
  0x15   :  { %36 = dma.hbm_to_vmem [thread:$0]  %s312_s2, 1024, %s31_s21, [#allocation7], %s255_s26, %s255_s26, %s256_s27  }
  0x16   :  { %249 = dma.done.wait [#allocation5], 128  }
  0x17   :  { %250 = vsyncadd [#allocation5], 4294967168 }
  0x18   :  { %251 = dma.done.wait [#allocation7], 1024  }
  0x19   :  { %252 = vsyncadd [#allocation7], 4294966272  ;;  %v257_v0 = vmov 0.0   ;;  %vm258_vm0 = vmmov 0   ;;  %v61_v1 = vld [vmem:[#allocation6 + $0x38] sm:$0xff]  ;;  %v60_v2 = vld [vmem:[#allocation6 + $0x30] sm:$0xff]  ;;  %v163_v20 = vstv %s310_s0 }
  0x1a   :  { %184 = vmatprep.subr.mxu0 %v257_v0  ;;  %200 = vmatprep.mubr.msk.f32.mxu0 %vm258_vm0, %v257_v0  ;;  %v59_v3 = vld [vmem:[#allocation6 + $0x28] sm:$0xff]  ;;  %v58_v4 = vld [vmem:[#allocation6 + $0x20] sm:$0xff]  ;;  %v57_v5 = vld [vmem:[#allocation6 + $0x18] sm:$0xff]  ;;  %vm69_vm1 = vcmask 523264   ;;  %vm51_vm2 = vcmask 7168  }
  0x1b   :  { %185 = vmatpush3.msra.mxu0 %v61_v1  ;;  %v56_v6 = vld [vmem:[#allocation6 + $0x10] sm:$0xff]  ;;  %v55_v7 = vld [vmem:[#allocation6 + $0x8] sm:$0xff]  ;;  %v54_v8 = vld [vmem:[#allocation6] sm:$0xff]  ;;  %52 = vst.msk [vmem:[#allocation2] sm:$0xff] %vm51_vm2, %v257_v0 }
  0x1c   :  { %186 = vmatprep.subr.mxu0 %v257_v0  ;;  %v53_v9 = vld [vmem:[#allocation4] sm:$0xff]  ;;  %v172_v10 = vld [vmem:[%s313_s3] ss:$0 sm:$0xff] }
  0x1d   :  { %187 = vmatpush3.msra.mxu0 %v60_v2  ;;  %v174_v14 = vld [vmem:[%s314_s4] ss:$0 sm:$0xff] }
  0x1e   :  { %188 = vmatprep.subr.mxu0 %v257_v0 }
  0x1f   :  { %189 = vmatpush3.msra.mxu0 %v59_v3 }
  0x20   :  { %190 = vmatprep.subr.mxu0 %v257_v0 }
  0x21   :  { %191 = vmatpush3.msra.mxu0 %v58_v4 }
  0x22   :  { %192 = vmatprep.subr.mxu0 %v257_v0  ;;  %v144_v17 = vld [vmem:[#allocation2] sm:$0xff] }
  0x23   :  { %193 = vmatpush3.msra.mxu0 %v57_v5 }
  0x24   :  { %194 = vmatprep.subr.mxu0 %v257_v0 }
  0x25   :  { %195 = vmatpush3.msra.mxu0 %v56_v6 }
  0x26   :  { %196 = vmatprep.subr.mxu0 %v257_v0 }
  0x27   :  { %197 = vmatpush3.msra.mxu0 %v55_v7 }
  0x28   :  { %198 = vmatprep.subr.mxu0 %v257_v0 }
  0x29   :  { %199 = vmatpush3.msra.mxu0 %v54_v8 }
  0x2a   :  { %201 = vmatmul.mubr.msk.f32.vlgmr.msra.gmra.mxu0 %vm69_vm1, %v53_v9 }
  0xea   :  { %v139_v11 = vpop.f32.mrf.mxu0 }
  0xeb   :  { %v140_v12 = vadd.f32 %v172_v10, %v139_v11 }
  0xec   :  { %v202_v13 = vpop.f32.mrf.mxu0 }
  0xed   :  { %v143_v15 = vmax.f32 %v140_v12, 0.0 }
  0xef   :  { %v152_v16 = vmul.f32 %v174_v14, %v143_v15 }
  0xf1   :  { %153 = vadd.xlane.f32.xlu0 %v152_v16 }
 0x17a   :  { %v154_v18 = vpop.xlane.xlu0 %153 }
 0x17b   :  { %v155_v19 = vadd.f32 %v154_v18, %v144_v17 }
 0x17d   :  { %157 = vst.msk [vmem:[#allocation2] sm:$0xff] %vm51_vm2, %v155_v19 }
 0x184   :  { %v161_v21 = vld [vmem:[#allocation2] sm:$0xff] }
 0x185   :  { %v164_v22 = vadd.f32 %v163_v20, %v161_v21 }
 0x187   :  { %165 = vst.msk [vmem:[%s315_s5] sm:$0xff] %vm51_vm2, %v164_v22 }
 0x188   :  { %170 = vsyncpa [#allocation5], 1 }
 0x189   :  { %171 = vsyncpa [#allocation7], 1 }

</bundles_post_ra>
